<compile_context>
chip_gen: v7x
topology: tpu7x:2x2x1
jax: 0.10.0
libtpu: 0.0.40
codegen_flags: <defaults>
</compile_context>

<pallas_src>
import math
import functools
import numpy as np
import jax
import jax.numpy as jnp
from jax.experimental import pallas as pl
from jax.experimental.pallas import tpu as pltpu


# ----------------------------------------------------------------------------
# Constants of CWT_TF.get_const, parameterised by the actual signal length
# (the PyTorch code hard-codes 4096; we keep the same math at small sizes).
# ----------------------------------------------------------------------------
def cwt_constants(sig_len, nv=8, sr=2048, flow=8, fhigh=500):
    max_scale = sig_len // (np.sqrt(2) * 2)
    if max_scale <= 1:
        max_scale = sig_len // 2
    max_scale = np.floor(nv * np.log2(max_scale))
    scales = 2 * (2 ** (1 / nv)) ** np.arange(0, max_scale + 1)
    frequencies = sr * (6 / (2 * np.pi)) / scales
    frequencies = frequencies[frequencies >= flow]
    scales = scales[0:len(frequencies)]
    frequencies = frequencies[frequencies <= fhigh]
    scales = scales[len(scales) - len(frequencies):len(scales)]

    padvalue = sig_len // 2
    n = padvalue * 2 + sig_len
    omega = np.arange(1, math.floor(n / 2) + 1, dtype=np.float64)
    omega = omega * (2 * np.pi) / n
    omega = np.concatenate(
        (np.array([0.0]), omega,
         -omega[np.arange(math.floor((n - 1) / 2), 0, -1, dtype=int) - 1]))
    wft = np.zeros([scales.size, omega.size], dtype=np.float64)
    for jj, scale in enumerate(scales):
        expnt = -(scale * omega - 6) ** 2 / 2 * (omega > 0)
        wft[jj, :] = 2 * np.exp(expnt) * (omega > 0)
    return wft, int(padvalue), int(n), int(scales.size)


# ----------------------------------------------------------------------------
# Pallas kernel: for a block of Bt signals:
#   positive-frequency spectra -> per-scale Morlet window -> windowed IDFT at the
#   surviving (nearest-interp) time columns -> 0.5*log(|.|^2 + eps) - log(n).
# The complex IDFT is done with real bf16 MXU matmuls (f32 accumulation) by stacking
# [re; im] along M and [cos | sin] along N; K is chunked so the windowed product
# never exists in full.
# ----------------------------------------------------------------------------
def cwt_kernel(f_ref, wft_ref, itrig_ref, o_ref, acc_ref, *, tk, log_n, eps):
    bt = f_ref.shape[0]
    kp = f_ref.shape[2]
    s = wft_ref.shape[0]
    t2 = itrig_ref.shape[1]
    t = t2 // 2
    nk = kp // tk

    acc_ref[...] = jnp.zeros_like(acc_ref)

    # static (fully unrolled) K-chunk loop; nk is small (<= 8 at production size)
    for kc in range(nk):
        off = kc * tk
        fch = f_ref[:, :, pl.ds(off, tk)]          # (Bt, 2, tk)  f32 spectra chunk
        wch = wft_ref[:, pl.ds(off, tk)]           # (S, tk)      f32 Morlet chunk
        tch = itrig_ref[pl.ds(off, tk), :]         # (tk, 2*T)    bf16 [cos | sin]
        # windowing in f32, rows ordered (signal, part, scale)
        g = fch[:, :, None, :] * wch[None, None, :, :]          # (Bt, 2, S, tk)
        gm = g.reshape(bt * 2 * s, tk).astype(jnp.bfloat16)     # (2*M, tk) bf16
        acc_ref[...] += jnp.dot(gm, tch, preferred_element_type=jnp.float32)

    y = acc_ref[...].reshape(bt, 2, s, t2)         # (Bt, 2, S, 2*T) f32
    yc = y[..., :t]                                # cos partial sums
    ys = y[..., t:]                                # sin partial sums
    c_re = yc[:, 0] - ys[:, 1]                     # (Bt, S, T)
    c_im = ys[:, 0] + yc[:, 1]
    # log|c|/n = 0.5*log(re^2 + im^2 + eps) - log(n); eps avoids -inf on f32 underflow
    o_ref[...] = 0.5 * jnp.log(c_re * c_re + c_im * c_im + eps) - log_n


def _vmem_limit_bytes():
    # ~3/4 of physical VMEM per generation (96 MiB on v5e/v6e, 48 MiB on v7x),
    # conservative 48 MiB fallback if the query is unavailable.
    try:
        info = pltpu.get_tpu_info()
        cap = getattr(info, "vmem_capacity_bytes", None)
        if cap:
            return int(min(cap * 3 // 4, 96 * 1024 * 1024))
    except Exception:
        pass
    return 48 * 1024 * 1024


def cwt_pallas(f, wft, itrig, bt, tk, log_n, eps):
    bp, _, kp = f.shape
    s_pad = wft.shape[0]
    t2 = itrig.shape[1]
    t = t2 // 2
    kernel = functools.partial(cwt_kernel, tk=tk, log_n=log_n, eps=eps)
    return pl.pallas_call(
        kernel,
        out_shape=jax.ShapeDtypeStruct((bp, s_pad, t), jnp.float32),
        grid_spec=pltpu.PrefetchScalarGridSpec(
            num_scalar_prefetch=0,
            grid=(bp // bt,),
            in_specs=[
                pl.BlockSpec((bt, 2, kp), lambda b: (b, 0, 0)),   # stacked re/im spectra
                pl.BlockSpec((s_pad, kp), lambda b: (0, 0)),      # Morlet windows (resident)
                pl.BlockSpec((kp, t2), lambda b: (0, 0)),         # fused [cos|sin] IDFT (resident, bf16)
            ],
            out_specs=pl.BlockSpec((bt, s_pad, t), lambda b: (b, 0, 0)),
            scratch_shapes=[pltpu.VMEM((bt * 2 * s_pad, t2), jnp.float32)],
        ),
        compiler_params=pltpu.CompilerParams(
            dimension_semantics=("parallel",),
            vmem_limit_bytes=_vmem_limit_bytes(),
        ),
    )(f, wft, itrig)


# ----------------------------------------------------------------------------
# CustomModel_CWT.get_full_spec equivalent (glue in plain JAX/numpy).
# ----------------------------------------------------------------------------
def get_full_spec(x, img_h, img_w, nv=8, sr=2048, flow=8, fhigh=500, bt=16):
    bs, ch, sig_len = x.shape
    b_tot = bs * ch
    x = x.reshape(b_tot, sig_len)

    wft_full, padvalue, n, num_scales = cwt_constants(sig_len, nv, sr, flow, fhigh)

    # flip-padding (matches torch.flip + cat in CWT_TF.forward)
    x_pad = jnp.concatenate(
        [x[:, :padvalue][:, ::-1], x, x[:, -padvalue:][:, ::-1]], axis=1
    ).astype(jnp.float32)

    # FFT outside the kernel (O(n log n) via XLA RFFT). The Morlet window is zero at
    # k=0 and on the whole negative-frequency half, so only k = 1..n//2 is kept.
    spec = jnp.fft.rfft(x_pad, axis=1)                    # (B, n//2 + 1) complex64
    f_re = jnp.real(spec)[:, 1:]                          # (B, K0)
    f_im = jnp.imag(spec)[:, 1:]

    k0 = n // 2
    kp = int(-(-k0 // 128) * 128)                         # lane-align contraction axis

    # signals per grid step: default 16, but lower so the parallel grid has >= 2 steps
    # (keeps both v7x TensorCores busy at small batch).
    bt = max(1, min(bt, (b_tot + 1) // 2))
    bp = int(-(-b_tot // bt) * bt)

    # in-kernel K chunk size (largest lane-aligned divisor of kp, capped at 1024)
    tk = kp
    for cand in (1024, 512, 384, 256, 128):
        if kp % cand == 0:
            tk = cand
            break

    # Fold the nearest-neighbour W interpolation into the IDFT: only the time columns
    # t = padvalue + wi that interpolate(..., mode='nearest') would select are computed.
    # cos and sin are fused into one (kp, 2*W) RHS; 1/n is folded into the log output.
    wi = (np.arange(img_w) * sig_len) // img_w
    t_sel = (padvalue + wi).astype(np.int64)
    kk = np.arange(1, k0 + 1, dtype=np.int64)
    theta = 2.0 * np.pi * (np.outer(kk, t_sel) % n) / n   # exact phase mod n, float64
    itrig = np.zeros((kp, 2 * img_w), dtype=np.float32)
    itrig[:k0, :img_w] = np.cos(theta)
    itrig[:k0, img_w:] = np.sin(theta)
    itrig = jnp.asarray(itrig, dtype=jnp.bfloat16)        # bf16 MXU operand

    # Morlet windows restricted to the positive-frequency half; scale axis padded to a
    # sublane multiple (padded rows give a finite floor value, sliced off below).
    s_pad = int(-(-num_scales // 8) * 8)
    wft = np.zeros((s_pad, kp), dtype=np.float32)
    wft[:num_scales, :k0] = wft_full[:, 1:k0 + 1].astype(np.float32)

    # single stacked spectra array (B, 2, K); zero-pad K (inert) and the batch.
    f = jnp.stack([f_re, f_im], axis=1)                   # (B, 2, K0)
    f = jnp.pad(f, ((0, bp - b_tot), (0, 0), (0, kp - k0)))

    out = cwt_pallas(f, jnp.asarray(wft), itrig, bt, tk,
                     log_n=float(np.log(n)), eps=1e-30)   # (Bp, S_pad, img_w)
    logcwt = out[:b_tot, :num_scales, :]                  # (B, S, img_w)

    # nearest-neighbour interpolation on the scale (H) axis; W was folded in-kernel.
    hi = (np.arange(img_h) * num_scales) // img_h
    img = logcwt[:, hi, :]                                # (B, H, W)
    return img.reshape(bs, ch, img_h, img_w).astype(jnp.float32)


if __name__ == "__main__":
    bs, ch, sig_len = 2, 3, 256        # ch must be 3 (matches view(bs, 3, h, w))
    img_h, img_w = 64, 64              # small stand-in for the default 256x256

    key = jax.random.PRNGKey(0)
    x = jax.random.normal(key, (bs, ch, sig_len), dtype=jnp.float32)

    img = get_full_spec(x, img_h, img_w)
    # TODO(synk): pretrained timm efficientnet_b0 classifier is not translated; the
    # kernel output is the NCHW CWT spectrogram image fed to that encoder.
    jax.block_until_ready(img)
    assert img.shape == (bs, 3, img_h, img_w)
    print("KERNEL_OK")
</pallas_src>

<mosaic_0001>
module attributes {stable_mosaic.version = 11 : i64} {
  func.func @cwt_kernel(%arg0: i32, %arg1: memref<3x2x256xf32, #tpu.memory_space<vmem>>, %arg2: memref<48x256xf32, #tpu.memory_space<vmem>>, %arg3: memref<256x128xbf16, #tpu.memory_space<vmem>>, %arg4: memref<3x48x64xf32, #tpu.memory_space<vmem>>, %arg5: memref<288x128xf32, #tpu.memory_space<vmem>>) attributes {dimension_semantics = [#tpu.dimension_semantics<parallel>], iteration_bounds = array<i64: 2>, scalar_prefetch = 0 : i64, scratch_operands = 1 : i64, tpu.core_type = #tpu.core_type<tc>, window_params = [{transform_indices = @transform_0, window_bounds = array<i64: 3, 2, 256>}, {pipeline_mode = #tpu.pipeline_mode<synchronous>, transform_indices = @transform_1, window_bounds = array<i64: 48, 256>}, {pipeline_mode = #tpu.pipeline_mode<synchronous>, transform_indices = @transform_2, window_bounds = array<i64: 256, 128>}, {transform_indices = @transform_3, window_bounds = array<i64: 3, 48, 64>}]} {
    %cst = arith.constant 0.000000e+00 : f32
    %0 = vector.broadcast %cst : f32 to vector<288x128xf32>
    %c0 = arith.constant 0 : index
    %c0_0 = arith.constant 0 : index
    %1 = vector.load %arg5[%c0, %c0_0] : memref<288x128xf32, #tpu.memory_space<vmem>>, vector<288x128xf32>
    tpu.vector_store %arg5[%c0, %c0_0], %0 {strides = array<i32>} : memref<288x128xf32, #tpu.memory_space<vmem>>, vector<288x128xf32>,
    %c0_1 = arith.constant 0 : index
    %c0_2 = arith.constant 0 : index
    %c0_3 = arith.constant 0 : index
    %2 = vector.load %arg1[%c0_1, %c0_2, %c0_3] : memref<3x2x256xf32, #tpu.memory_space<vmem>>, vector<3x2x256xf32>
    %c0_4 = arith.constant 0 : index
    %c0_5 = arith.constant 0 : index
    %3 = vector.load %arg2[%c0_4, %c0_5] : memref<48x256xf32, #tpu.memory_space<vmem>>, vector<48x256xf32>
    %c0_6 = arith.constant 0 : index
    %c0_7 = arith.constant 0 : index
    %4 = vector.load %arg3[%c0_6, %c0_7] : memref<256x128xbf16, #tpu.memory_space<vmem>>, vector<256x128xbf16>
    %5 = vector.shape_cast %2 : vector<3x2x256xf32> to vector<3x2x1x256xf32>
    %6 = vector.shape_cast %3 : vector<48x256xf32> to vector<1x1x48x256xf32>
    %7 = vector.broadcast %5 : vector<3x2x1x256xf32> to vector<3x2x48x256xf32>
    %8 = vector.broadcast %6 : vector<1x1x48x256xf32> to vector<3x2x48x256xf32>
    %9 = arith.mulf %7, %8 : vector<3x2x48x256xf32>
    %10 = vector.shape_cast %9 : vector<3x2x48x256xf32> to vector<288x256xf32>
    %11 = arith.truncf %10 : vector<288x256xf32> to vector<288x256xbf16>
    %c0_8 = arith.constant 0 : index
    %c0_9 = arith.constant 0 : index
    %12 = vector.load %arg5[%c0_8, %c0_9] : memref<288x128xf32, #tpu.memory_space<vmem>>, vector<288x128xf32>
    %cst_10 = arith.constant dense<0.000000e+00> : vector<288x128xf32>
    %13 = tpu.matmul %11, %4, %cst_10 {dimension_numbers = #tpu.dot_dimension_numbers<[1], [0], [0], [1], [0, 0, 1, 1], [], []>} : vector<288x256xbf16>, vector<256x128xbf16>, vector<288x128xf32> -> vector<288x128xf32>
    %14 = arith.addf %12, %13 : vector<288x128xf32>
    %c0_11 = arith.constant 0 : index
    %c0_12 = arith.constant 0 : index
    %15 = vector.load %arg5[%c0_11, %c0_12] : memref<288x128xf32, #tpu.memory_space<vmem>>, vector<288x128xf32>
    tpu.vector_store %arg5[%c0_11, %c0_12], %14 {strides = array<i32>} : memref<288x128xf32, #tpu.memory_space<vmem>>, vector<288x128xf32>,
    %c0_13 = arith.constant 0 : index
    %c0_14 = arith.constant 0 : index
    %16 = vector.load %arg5[%c0_13, %c0_14] : memref<288x128xf32, #tpu.memory_space<vmem>>, vector<288x128xf32>
    %17 = vector.shape_cast %16 : vector<288x128xf32> to vector<3x2x48x128xf32>
    %18 = vector.extract_strided_slice %17 {offsets = [0, 0, 0, 0], sizes = [3, 2, 48, 64], strides = [1, 1, 1, 1]} : vector<3x2x48x128xf32> to vector<3x2x48x64xf32>
    %19 = vector.extract_strided_slice %17 {offsets = [0, 0, 0, 64], sizes = [3, 2, 48, 64], strides = [1, 1, 1, 1]} : vector<3x2x48x128xf32> to vector<3x2x48x64xf32>
    %20 = vector.extract_strided_slice %18 {offsets = [0, 0, 0, 0], sizes = [3, 1, 48, 64], strides = [1, 1, 1, 1]} : vector<3x2x48x64xf32> to vector<3x1x48x64xf32>
    %21 = vector.shape_cast %20 : vector<3x1x48x64xf32> to vector<3x48x64xf32>
    %22 = vector.extract_strided_slice %19 {offsets = [0, 1, 0, 0], sizes = [3, 1, 48, 64], strides = [1, 1, 1, 1]} : vector<3x2x48x64xf32> to vector<3x1x48x64xf32>
    %23 = vector.shape_cast %22 : vector<3x1x48x64xf32> to vector<3x48x64xf32>
    %24 = arith.subf %21, %23 : vector<3x48x64xf32>
    %25 = vector.extract_strided_slice %19 {offsets = [0, 0, 0, 0], sizes = [3, 1, 48, 64], strides = [1, 1, 1, 1]} : vector<3x2x48x64xf32> to vector<3x1x48x64xf32>
    %26 = vector.shape_cast %25 : vector<3x1x48x64xf32> to vector<3x48x64xf32>
    %27 = vector.extract_strided_slice %18 {offsets = [0, 1, 0, 0], sizes = [3, 1, 48, 64], strides = [1, 1, 1, 1]} : vector<3x2x48x64xf32> to vector<3x1x48x64xf32>
    %28 = vector.shape_cast %27 : vector<3x1x48x64xf32> to vector<3x48x64xf32>
    %29 = arith.addf %26, %28 : vector<3x48x64xf32>
    %30 = arith.mulf %24, %24 : vector<3x48x64xf32>
    %31 = arith.mulf %29, %29 : vector<3x48x64xf32>
    %32 = arith.addf %30, %31 : vector<3x48x64xf32>
    %cst_15 = arith.constant 1.000000e-30 : f32
    %33 = vector.broadcast %cst_15 : f32 to vector<3x48x64xf32>
    %34 = arith.addf %32, %33 : vector<3x48x64xf32>
    %35 = math.log %34 : vector<3x48x64xf32>
    %cst_16 = arith.constant 5.000000e-01 : f32
    %36 = vector.broadcast %cst_16 : f32 to vector<3x48x64xf32>
    %37 = arith.mulf %36, %35 : vector<3x48x64xf32>
    %cst_17 = arith.constant 6.23832464 : f32
    %38 = vector.broadcast %cst_17 : f32 to vector<3x48x64xf32>
    %39 = arith.subf %37, %38 : vector<3x48x64xf32>
    %c0_18 = arith.constant 0 : index
    %c0_19 = arith.constant 0 : index
    %c0_20 = arith.constant 0 : index
    %40 = vector.load %arg4[%c0_18, %c0_19, %c0_20] : memref<3x48x64xf32, #tpu.memory_space<vmem>>, vector<3x48x64xf32>
    tpu.vector_store %arg4[%c0_18, %c0_19, %c0_20], %39 {strides = array<i32>} : memref<3x48x64xf32, #tpu.memory_space<vmem>>, vector<3x48x64xf32>,
    return
  }
  func.func @transform_0(%arg0: i32) -> (i32, i32, i32) {
    %c0_i32 = arith.constant 0 : i32
    %c0_i32_0 = arith.constant 0 : i32
    %c0_i32_1 = arith.constant 0 : i32
    return %arg0, %c0_i32, %c0_i32_0 : i32, i32, i32
  }
  func.func @transform_1(%arg0: i32) -> (i32, i32) {
    %c0_i32 = arith.constant 0 : i32
    %c0_i32_0 = arith.constant 0 : i32
    %c0_i32_1 = arith.constant 0 : i32
    return %c0_i32, %c0_i32_0 : i32, i32
  }
  func.func @transform_2(%arg0: i32) -> (i32, i32) {
    %c0_i32 = arith.constant 0 : i32
    %c0_i32_0 = arith.constant 0 : i32
    %c0_i32_1 = arith.constant 0 : i32
    return %c0_i32, %c0_i32_0 : i32, i32
  }
  func.func @transform_3(%arg0: i32) -> (i32, i32, i32) {
    %c0_i32 = arith.constant 0 : i32
    %c0_i32_0 = arith.constant 0 : i32
    %c0_i32_1 = arith.constant 0 : i32
    return %arg0, %c0_i32, %c0_i32_0 : i32, i32, i32
  }
}

</mosaic_0001>

<bundles_post_ra>
// kernel: tpu_custom_call.1
= control target key start
LH: loop header
LB: loop body
LE: loop exit
PB: predicated region body
PF: predicated region fallthrough
CT: control target
= control target key end

     0   :  { %8 = vsyncpa [#allocation4], 0  ;;  %s2439_s0 = inlined_call_operand.hbm [shape: f32[6,2,256], index: 0, kind: input, shape index: {}]   ;;  %s2440_s1 = inlined_call_operand.hbm [shape: f32[48,256], index: 1, kind: input, shape index: {}]   ;;  %s2441_s2 = inlined_call_operand.hbm [shape: bf16[256,128], index: 2, kind: input, shape index: {}]   ;;  %s2442_s3 = inlined_call_operand.hbm [shape: f32[6,48,64], index: 3, kind: output, shape index: {}]  }
   0x1   :  { %10 = vsyncpa [#allocation4 + $0x1], 0 }
   0x2   :  { %11 = vsyncpa [#allocation7], 0 }
   0x3   :  { %12 = vsyncpa [#allocation5], 0 }
   0x4   :  { %14 = vsyncpa [#allocation5 + $0x1], 0  ;;  %s1774_s12 = smov 0   ;;  %s1776_s13 = smov 0  }
   0x5   :  { %s1778_s14 = smov 0   ;;  %s1780_s15 = smov 0  }
   0x6 LB: > { %s1795_s16 = sadd.s32 4294967295, %s1740_s15   ;;  %s1367_s17 = sadd.s32 4294967294, %s1740_s15   ;;  %s1740_s15 = sphi %s1780_s15, %s2462_s15   ;;  %s1736_s14 = sphi %s1778_s14, %s2461_s14   ;;  %s1732_s13 = sphi %s1776_s13, %s2460_s13   ;;  %s1728_s12 = sphi %s1774_s12, %s2459_s12  }
   0x7   : > { %p40_p0 = scmp.ne.s32.totalorder %s1732_s13, %s1728_s12  ;;  %p2443_p1 = scmp.eq.s32.totalorder %s1795_s16, 0 }
   0x8   : > { %p112_p3 = scmp.eq.s32.totalorder %s1367_s17, 1  ;;  %p1368_p5 = scmp.ge.s32.totalorder %s1740_s15, 1 }
   0x9   : > { %p1804_p4 = por %p2443_p1, %p40_p0  ;;  %p119_p7 = scmp.lt.s32.totalorder %s1740_s15, 3 }
   0xa   : > { %p1809_p6 = por %p112_p3, %p40_p0  ;;  %s1742_s21 = smov [#allocation6]  }
   0xb   : > { %s2446_s18 = scalar_select %p1804_p4, 1, 0 }
   0xc   : > { %s2447_s19 = scalar_select %p1809_p6, 1, 0 }
   0xd   : > { %p1814_p8 = pnand %p1368_p5, %p119_p7  ;;  %s131_s22 = sshll.u32 %s1742_s21, 4  ;;  %s1818_s22 = int_to_ptr.vmem [resolvable:$true] %s131_s22 }
   0xe   : > { %s1743_s24 = smov [#allocation8]   ;;  %s1584_s28 = scalar_lea.hbm %s2440_s1, 1536 }
   0xf   : > { %p1468_p9 = pneg %p1814_p8  ;;  %s144_s25 = sshll.u32 %s1743_s24, 4  ;;  %s1829_s25 = int_to_ptr.vmem [resolvable:$true] %s144_s25 }
  0x10   : > { %p1585_p12 = scmp.ne.s32.totalorder %s2440_s1, %s1584_s28  ;;  %p1591_p5 = scmp.lt.u32.totalorder %s1584_s28, %s2440_s1 }
  0x11   : > { %p1825_p11 = pnand %p1468_p9, %p2443_p1 }
  0x13   : > { %p1586_p13 = pneg %p1825_p11 }
  0x15   : > { %p1587_p0 = pnand %p1586_p13, %p1585_p12 }
  0x17   : > { %p1588_p3 = pneg %p1587_p0 }
  0x19   : > { %p1593_p7 = pnand %p1591_p5, %p1588_p3 }
  0x1b   : > { %1596 = shalt.err (!%p1593_p7)
}
  0x1c   : > { %s1597_s6 = scalar_lea.vmem %s1818_s22, 1536  ;;  %p1605_p2 = scmp.lt.s32.totalorder %s1818_s22, %s1818_s22 }
  0x1d   : > { %p1598_p9 = scmp.ne.s32.totalorder %s1818_s22, %s1597_s6  ;;  %p1606_p12 = scmp.lt.s32.totalorder %s1597_s6, %s1597_s6 }
  0x1f   : > { %p1600_p10 = pnand %p1598_p9, %p1586_p13  ;;  %p1607_p0 = por %p1606_p12, %p1605_p2 }
  0x21   : > { %p1601_p1 = pneg %p1600_p10 }
  0x23   : > { %p1608_p6 = pnand %p1607_p0, %p1601_p1 }
  0x25   : > { %1611 = shalt.err (!%p1608_p6)
}
  0x26   : > { %s1744_s7 = smov 256   ;;  %s1745_s8 = smov 16  }
  0x27   : > { %1471 = dma.hbm_to_vmem [thread:$0]  (!%p1825_p11), %s2440_s1, 1536, %s1818_s22, [#allocation7], %s1744_s7, %s1744_s7, %s1745_s8  }
  0x28   : > { %s1612_s21 = scalar_lea.hbm %s2441_s2, 2048 }
  0x29   : > { %p1613_p2 = scmp.ne.s32.totalorder %s2441_s2, %s1612_s21  ;;  %p1619_p10 = scmp.lt.u32.totalorder %s1612_s21, %s2441_s2 }
  0x2b   : > { %p1615_p1 = pnand %p1613_p2, %p1586_p13 }
  0x2d   : > { %p1616_p6 = pneg %p1615_p1 }
  0x2f   : > { %p1621_p3 = pnand %p1619_p10, %p1616_p6 }
  0x31   : > { %1624 = shalt.err (!%p1621_p3)
}
  0x32   : > { %s1625_s22 = scalar_lea.vmem %s1829_s25, 2048  ;;  %p1633_p12 = scmp.lt.s32.totalorder %s1829_s25, %s1829_s25 }
  0x33   : > { %p1626_p5 = scmp.ne.s32.totalorder %s1829_s25, %s1625_s22  ;;  %p1634_p0 = scmp.lt.s32.totalorder %s1625_s22, %s1625_s22 }
  0x35   : > { %p1628_p7 = pnand %p1626_p5, %p1586_p13  ;;  %p1635_p2 = por %p1634_p0, %p1633_p12 }
  0x37   : > { %p1629_p9 = pneg %p1628_p7 }
  0x39   : > { %p1636_p1 = pnand %p1635_p2, %p1629_p9 }
  0x3b   : > { %1639 = shalt.err (!%p1636_p1)
}
  0x3c   : > { %s1746_s29 = smov 64   ;;  %s1747_s30 = smov 4  }
  0x3d   : > { %1474 = dma.hbm_to_vmem [thread:$0]  (!%p1825_p11), %s2441_s2, 2048, %s1829_s25, [#allocation7], %s1746_s29, %s1746_s29, %s1747_s30  }
  0x3e   : > { %s1887_s6 = sadd.s32 1, %s1740_s15   ;;  %s27_s8 = sadd.s32 1, %s1736_s14 }
  0x3f   : > { %s24_s7 = ssub.s32 %s1740_s15, %s1887_s6  ;;  %p34_p6 = scmp.ne.s32.totalorder %s1736_s14, %s1732_s13 }
  0x40   : > { %p25_p13 = scmp.eq.s32.totalorder %s24_s7, 0  ;;  %p35_p10 = scmp.eq.s32.totalorder %s1740_s15, 0 }
  0x41   : > { %p2450_p5 = scmp.eq.s32.totalorder %s1795_s16, 1  ;;  %p1485_p9 = scmp.lt.s32.totalorder %s1740_s15, 2 }
  0x42   : > { %s1896_s9 = scalar_select %p25_p13, %s1736_s14, %s27_s8  }
  0x43   : > { %p36_p3 = por %p35_p10, %p34_p6  ;;  %p1900_p7 = por %p2450_p5, %p34_p6 }
  0x44   : > { %s158_s10 = sand.u32 1, %s1736_s14   ;;  %s1419_s25 = smul.u32 192, %s1740_s15 }
  0x45   : > { %s2451_s23 = scalar_select %p1900_p7, 1, 0 }
  0x46   : > { %s1452_s11 = smul.u32 12, %s158_s10  ;;  %p1907_p11 = pnand %p1485_p9, %p36_p3 }
  0x47   : > { %s1914_s26 = scalar_lea.hbm %s2439_s0, %s1419_s25  ;;  %s1918_s22 = scalar_lea.sflag [#allocation4], %s158_s10 }
  0x48   : > { %s162_s27 = scalar_lea.vmem [#allocation3], %s1452_s11  ;;  %s1640_s4 = scalar_lea.hbm %s1914_s26, 192 }
  0x49   : > { %s170_s28 = sshll.u32 %s162_s27, 4  ;;  %p1641_p12 = scmp.ne.s32.totalorder %s1914_s26, %s1640_s4  ;;  %s1916_s28 = int_to_ptr.vmem [resolvable:$true] %s170_s28 }
  0x4a   : > { %p1642_p0 = pneg %p1907_p11  ;;  %s1645_s8 = scalar_lea.hbm %s2439_s0, 384 }
  0x4b   : > { %p1646_p13 = scmp.lt.u32.totalorder %s1914_s26, %s2439_s0  ;;  %p1647_p6 = scmp.lt.u32.totalorder %s1645_s8, %s1640_s4 }
  0x4c   : > { %p1643_p2 = pnand %p1642_p0, %p1641_p12  ;;  %p1649_p3 = scmp.lt.u32.totalorder %s1640_s4, %s1914_s26 }
  0x4d   : > { %p1648_p10 = por %p1647_p6, %p1646_p13 }
  0x4e   : > { %p1644_p1 = pneg %p1643_p2 }
  0x4f   : > { %p1650_p5 = por %p1649_p3, %p1648_p10 }
  0x51   : > { %p1651_p9 = pnand %p1650_p5, %p1644_p1 }
  0x53   : > { %1654 = shalt.err (!%p1651_p9)
}
  0x54   : > { %s1655_s10 = scalar_lea.vmem %s1916_s28, 192  ;;  %s1748_s11 = smov [#allocation3]  }
  0x55   : > { %p1656_p12 = scmp.ne.s32.totalorder %s1916_s28, %s1655_s10  ;;  %s1660_s24 = sshll.u32 %s1748_s11, 4  ;;  %s1661_s24 = int_to_ptr.vmem [resolvable:$false] %s1660_s24 }
  0x56   : > { %s1662_s27 = scalar_lea.vmem %s1661_s24, 384  ;;  %p1663_p4 = scmp.lt.s32.totalorder %s1916_s28, %s1661_s24 }
  0x57   : > { %p1658_p2 = pnand %p1656_p12, %p1642_p0  ;;  %p1664_p13 = scmp.lt.s32.totalorder %s1662_s27, %s1655_s10 }
  0x59   : > { %p1659_p7 = pneg %p1658_p2  ;;  %p1665_p6 = por %p1664_p13, %p1663_p4 }
  0x5b   : > { %p1666_p10 = pnand %p1665_p6, %p1659_p7 }
  0x5d   : > { %1669 = shalt.err (!%p1666_p10)
}
  0x5e   : > { %1478 = dma.hbm_to_vmem [thread:$0]  (!%p1907_p11), %s1914_s26, 192, %s1916_s28, %s1918_s22, %s1746_s29, %s1746_s29, %s1747_s30  }
  0x5f   : > { %182 = sbr.rel (%p1814_p8) target bundleno = 719 (0x2cf), region = 32  ;;  %s1952_s4 = sand.u32 (!%p1814_p8), 1, %s1732_s13  }
  0x60   : > { %s1453_s5 = smul.u32 (!%p1814_p8), 12, %s1952_s4  ;;  %s185_s7 = scalar_lea.sflag (!%p1814_p8), [#allocation4], %s1952_s4 }
  0x61   : > { %p2453_p4 = scmp.ne.s32.totalorder (!%p1814_p8), %s2446_s18, 0 }
  0x62   : > { %s1956_s8 = scalar_lea.vmem (!%p1814_p8), [#allocation3], %s1453_s5 }
  0x66   : > { %1715 = dma.done.wait (%p2453_p4), %s185_s7, 192  }
  0x67   : > { %1717 = vsyncadd (%p2453_p4), %s185_s7, 4294967104  ;;  %p2454_p7 = scmp.eq.s32.totalorder %s1795_s16, 0 }
  0x69   : > { %1719 = dma.done.wait (%p2454_p7), [#allocation7], 3584   ;;  %p2455_p8 = pmov %p2454_p7 }
  0x6a   : > { %v1749_v0 = vmov 0   ;;  %v1532_v1 = vld [vmem:[#allocation8] sm:$0xff]   ;;  %v1533_v2 = vld [vmem:[#allocation8 + $0x8] sm:$0xff]   ;;  %v332_v3 = vlaneseq  ;;  %v1534_v4 = vld [vmem:[#allocation8 + $0x10] sm:$0xff]   ;;  %s1750_s18 = smov 64   ;;  %s1454_s20 = smul.u32 144, %s1952_s4 }
  0x6b   : > { %1721 = vsyncadd (%p2455_p8), [#allocation7], 4294963712  ;;  %632 = vmatprep.subr.bf16.mxu0 %v1749_v0  ;;  %1420 = vmatprep.subr.bf16.mxu1 %v1749_v0  ;;  %v1535_v6 = vld [vmem:[#allocation8 + $0x18] sm:$0xff]   ;;  %v1536_v8 = vld [vmem:[#allocation8 + $0x20] sm:$0xff]   ;;  %vm1241_vm0 = vcmask 523264   ;;  %s1488_s30 = smul.u32 2304, %s1795_s16 }
  0x6c   : > { %633 = vmatpush1.bf16.msra.mxu0 %v1532_v1  ;;  %1436 = vmatpush1.bf16.msra.mxu1 %v1532_v1  ;;  %v1972_v5 = vshrl.u32 %v332_v3, 7  ;;  %v1982_v9 = vld.sshfl [vmem:[%s1956_s8] sm:$0x33 pattern:$0x75316420]  ;;  %v1986_v11 = vld [vmem:[#allocation6 + $0x18] sm:$0xff] }
  0x6d   : > { %634 = vmatprep.subr.bf16.mxu0 %v1749_v0  ;;  %1421 = vmatprep.subr.bf16.mxu1 %v1749_v0  ;;  %v1984_v10 = vld [vmem:[#allocation6 + $0x8] sm:$0xff]  ;;  %v1538_v21 = vld [vmem:[#allocation8 + $0x30] sm:$0xff]   ;;  %v1539_v25 = vld [vmem:[#allocation8 + $0x38] sm:$0xff]   ;;  %v315_v3 = vcombine.high %v1982_v9, %v1982_v9  ;;  %s2326_s29 = scalar_lea.vmem [#allocation9], %s1454_s20  ;;  %s2389_s22 = scalar_lea.hbm %s2442_s3, %s1488_s30 }
  0x6e   : > { %v1977_v7 = vsub.s32 1, %v1972_v5  ;;  %v1993_v13 = vld.sshfl [vmem:[%s1956_s8 + $0x4] sm:$0x33 pattern:$0x75316420]  ;;  %v1540_v26 = vld [vmem:[#allocation8 + $0x40] sm:$0xff]  }
  0x6f   : > { %v1537_v14 = vld [vmem:[#allocation8 + $0x28] sm:$0xff]   ;;  %v1997_v15 = vcombine.high %v1993_v13, %v1993_v13  ;;  %v1542_v28 = vld [vmem:[#allocation8 + $0x50] sm:$0xff]   ;;  %v1543_v33 = vld [vmem:[#allocation8 + $0x58] sm:$0xff]   ;;  %v2063_v40 = vsub.s32 0, %v1972_v5  ;;  %s1275_s17 = sshll.u32 %s2326_s29, 4  ;;  %s1261_s16 = scalar_lea.sflag [#allocation5], %s1952_s4  ;;  %s2391_s17 = int_to_ptr.vmem [resolvable:$true] %s1275_s17 }
  0x70   : > { %635 = vmatpush1.bf16.msra.mxu0 %v1533_v2  ;;  %1437 = vmatpush1.bf16.msra.mxu1 %v1533_v2  ;;  %v1990_v12 = vrot.slane %v1982_v9, %v1977_v7  ;;  %v2001_v16 = vrot.slane %v1993_v13, %v1977_v7  ;;  %v1541_v27 = vld [vmem:[#allocation8 + $0x48] sm:$0xff]   ;;  %v2028_v29 = vld.sshfl [vmem:[%s1956_s8 + $0x8] sm:$0x33 pattern:$0x75316420]  ;;  %v1544_v38 = vld [vmem:[#allocation8 + $0x60] sm:$0xff]  }
  0x71   : > { %636 = vmatprep.subr.bf16.mxu0 %v1749_v0  ;;  %1422 = vmatprep.subr.bf16.mxu1 %v1749_v0  ;;  %v2011_v19 = vrot.slane %v1997_v15, %v1977_v7  ;;  %v2032_v30 = vcombine.high %v2028_v29, %v2028_v29  ;;  %v1545_v41 = vld [vmem:[#allocation8 + $0x68] sm:$0xff]   ;;  %v335_v42 = vrot.slane %v1982_v9, %v2063_v40  ;;  %v2069_v43 = vld [vmem:[#allocation6] sm:$0xff]  ;;  %v1546_v45 = vld [vmem:[#allocation8 + $0x70] sm:$0xff]   ;;  %s1670_s25 = scalar_lea.vmem %s2391_s17, 2304  ;;  %p2456_p0 = scmp.ne.s32.totalorder %s2451_s23, 0 }
  0x72   : > { %v393_v17 = vmul.f32 %v1990_v12, %v1984_v10  ;;  %v395_v18 = vmul.f32 %v1990_v12, %v1986_v11  ;;  %v2036_v31 = vmul.f32 %v2001_v16, %v1984_v10  ;;  %v2040_v32 = vmul.f32 %v2001_v16, %v1986_v11  ;;  %v2073_v46 = vld [vmem:[#allocation6 + $0x10] sm:$0xff]  ;;  %v2075_v47 = vld [vmem:[#allocation6 + $0x28] sm:$0xff]  ;;  %v2079_v48 = vld [vmem:[#allocation6 + $0x38] sm:$0xff]  ;;  %p1671_p11 = scmp.ne.s32.totalorder %s2391_s17, %s1670_s25  ;;  %s1751_s21 = smov [#allocation9]  }
  0x73   : > { %v429_v22 = vmul.f32 %v2011_v19, %v1984_v10  ;;  %v431_v23 = vmul.f32 %v2011_v19, %v1986_v11  ;;  %v2044_v34 = vrot.slane %v2032_v30, %v1977_v7  ;;  %v359_v44 = vrot.slane %v1997_v15, %v2063_v40  ;;  %v1547_v54 = vld [vmem:[#allocation8 + $0x78] sm:$0xff]   ;;  %v2095_v60 = vld [vmem:[#allocation6 + $0x20] sm:$0xff]  ;;  %v2097_v61 = vld [vmem:[#allocation6 + $0x30] sm:$0xff]  ;;  %s1674_s10 = sshll.u32 %s1751_s21, 4  ;;  %s1675_s10 = int_to_ptr.vmem [resolvable:$false] %s1674_s10 }
  0x74   : > { %637 = vmatpush1.bf16.msra.mxu0 %v1534_v4  ;;  %1438 = vmatpush1.bf16.msra.mxu1 %v1534_v4  ;;  %v465_v20 = vpack.c.bf16 %v395_v18, %v393_v17  ;;  %v477_v35 = vpack.c.bf16 %v2040_v32, %v2036_v31  ;;  %v392_v49 = vmul.f32 %v335_v42, %v2069_v43  ;;  %v2099_v1 = vld [vmem:[#allocation6 + $0x48] sm:$0xff]  ;;  %v2101_v2 = vld [vmem:[#allocation6 + $0x58] sm:$0xff]  ;;  %p1672_p1 = pnand %p1671_p11, %p2456_p0  ;;  %s1676_s11 = scalar_lea.vmem %s1675_s10, 4608 }
  0x75   : > { %638 = vmatprep.subr.bf16.mxu0 %v1749_v0  ;;  %1423 = vmatprep.subr.bf16.mxu1 %v1749_v0  ;;  %v483_v24 = vpack.c.bf16 %v431_v23, %v429_v22  ;;  %v2052_v36 = vmul.f32 %v2044_v34, %v1984_v10  ;;  %v2056_v37 = vmul.f32 %v2044_v34, %v1986_v11  ;;  %p1677_p5 = scmp.lt.s32.totalorder %s2391_s17, %s1675_s10  ;;  %p1678_p9 = scmp.lt.s32.totalorder %s1676_s11, %s1670_s25 }
  0x76   : > { %664 = vmatprep.mubr.bf16.mxu0 %v465_v20  ;;  %v394_v50 = vmul.f32 %v335_v42, %v2073_v46  ;;  %v428_v51 = vmul.f32 %v359_v44, %v2069_v43  ;;  %v430_v52 = vmul.f32 %v359_v44, %v2073_v46  ;;  %v397_v53 = vmul.f32 %v1990_v12, %v2075_v47  ;;  %v2117_v20 = vld [vmem:[#allocation6 + $0x40] sm:$0xff]  ;;  %p1673_p3 = pneg %p1672_p1 }
  0x77   : > { %736 = vmatprep.mubr.bf16.mxu1 %v483_v24  ;;  %v495_v39 = vpack.c.bf16 %v2056_v37, %v2052_v36  ;;  %v399_v55 = vmul.f32 %v1990_v12, %v2079_v48  ;;  %v433_v56 = vmul.f32 %v2011_v19, %v2075_v47  ;;  %v435_v57 = vmul.f32 %v2011_v19, %v2079_v48  ;;  %p1679_p12 = por %p1678_p9, %p1677_p5 }
  0x78   : > { %639 = vmatpush1.bf16.msra.mxu0 %v1535_v6  ;;  %1439 = vmatpush1.bf16.msra.mxu1 %v1535_v6  ;;  %v464_v58 = vpack.c.bf16 %v394_v50, %v392_v49  ;;  %v482_v59 = vpack.c.bf16 %v430_v52, %v428_v51  ;;  %v396_v4 = vmul.f32 %v335_v42, %v2095_v60 }
  0x79   : > { %640 = vmatprep.subr.bf16.mxu0 %v1749_v0  ;;  %1424 = vmatprep.subr.bf16.mxu1 %v1749_v0  ;;  %v467_v62 = vpack.c.bf16 %v399_v55, %v397_v53  ;;  %v485_v63 = vpack.c.bf16 %v435_v57, %v433_v56  ;;  %v432_v5 = vmul.f32 %v359_v44, %v2095_v60  ;;  %p1680_p2 = pnand %p1679_p12, %p1673_p3 }
  0x7a   : > { %v434_v6 = vmul.f32 %v359_v44, %v2097_v61  ;;  %v437_v9 = vmul.f32 %v2011_v19, %v2099_v1  ;;  %v439_v15 = vmul.f32 %v2011_v19, %v2101_v2  ;;  %v347_v22 = vrot.slane %v315_v3, %v1977_v7 }
  0x7b   : > { %v436_v19 = vmul.f32 %v359_v44, %v2117_v20  ;;  %v367_v49 = vrot.slane %v2028_v29, %v2063_v40  ;;  %v463_v32 = vmul.f32 %v2044_v34, %v2101_v2 }
  0x7c   : > { %641 = vmatpush1.bf16.msra.mxu0 %v1536_v8  ;;  %1440 = vmatpush1.bf16.msra.mxu1 %v1536_v8  ;;  %v401_v8 = vmul.f32 %v1990_v12, %v2099_v1  ;;  %v484_v18 = vpack.c.bf16 %v434_v6, %v432_v5  ;;  %v487_v24 = vpack.c.bf16 %v439_v15, %v437_v9 }
  0x7d   : > { %642 = vmatprep.subr.bf16.mxu0 %v1749_v0  ;;  %1425 = vmatprep.subr.bf16.mxu1 %v1749_v0  ;;  %v440_v53 = vmul.f32 %v367_v49, %v2069_v43  ;;  %v415_v5 = vmul.f32 %v347_v22, %v2101_v2 }
  0x80   : > { %643 = vmatpush1.bf16.msra.mxu0 %v1537_v14  ;;  %1441 = vmatpush1.bf16.msra.mxu1 %v1537_v14  ;;  %v403_v14 = vmul.f32 %v1990_v12, %v2101_v2  ;;  %v400_v12 = vmul.f32 %v335_v42, %v2117_v20 }
  0x81   : > { %644 = vmatprep.subr.bf16.mxu0 %v1749_v0  ;;  %1426 = vmatprep.subr.bf16.mxu1 %v1749_v0 }
  0x82   : > { %v469_v23 = vpack.c.bf16 %v403_v14, %v401_v8 }
  0x84   : > { %645 = vmatpush1.bf16.msra.mxu0 %v1538_v21  ;;  %1442 = vmatpush1.bf16.msra.mxu1 %v1538_v21  ;;  %v2119_v21 = vld [vmem:[#allocation6 + $0x50] sm:$0xff] }
  0x85   : > { %646 = vmatprep.subr.bf16.mxu0 %v1749_v0  ;;  %1427 = vmatprep.subr.bf16.mxu1 %v1749_v0 }
  0x88   : > { %647 = vmatpush1.bf16.msra.mxu0 %v1539_v25  ;;  %1443 = vmatpush1.bf16.msra.mxu1 %v1539_v25  ;;  %v371_v25 = vrot.slane %v2028_v29, %v1977_v7 }
  0x89   : > { %648 = vmatprep.subr.bf16.mxu0 %v1749_v0  ;;  %1428 = vmatprep.subr.bf16.mxu1 %v1749_v0 }
  0x8a   : > { %v443_v7 = vmul.f32 %v371_v25, %v1986_v11  ;;  %v445_v29 = vmul.f32 %v371_v25, %v2075_v47  ;;  %v447_v55 = vmul.f32 %v371_v25, %v2079_v48  ;;  %v449_v6 = vmul.f32 %v371_v25, %v2099_v1 }
  0x8b   : > { %v451_v8 = vmul.f32 %v371_v25, %v2101_v2 }
  0x8c   : > { %649 = vmatpush1.bf16.msra.mxu0 %v1540_v26  ;;  %1444 = vmatpush1.bf16.msra.mxu1 %v1540_v26  ;;  %v402_v26 = vmul.f32 %v335_v42, %v2119_v21 }
  0x8d   : > { %650 = vmatprep.subr.bf16.mxu0 %v1749_v0  ;;  %1429 = vmatprep.subr.bf16.mxu1 %v1749_v0 }
  0x90   : > { %651 = vmatpush1.bf16.msra.mxu0 %v1541_v27  ;;  %1445 = vmatpush1.bf16.msra.mxu1 %v1541_v27  ;;  %v438_v27 = vmul.f32 %v359_v44, %v2119_v21 }
  0x91   : > { %652 = vmatprep.subr.bf16.mxu0 %v1749_v0  ;;  %1430 = vmatprep.subr.bf16.mxu1 %v1749_v0 }
  0x94   : > { %653 = vmatpush1.bf16.msra.mxu0 %v1542_v28  ;;  %1446 = vmatpush1.bf16.msra.mxu1 %v1542_v28  ;;  %v405_v28 = vmul.f32 %v347_v22, %v1984_v10 }
  0x95   : > { %654 = vmatprep.subr.bf16.mxu0 %v1749_v0  ;;  %1431 = vmatprep.subr.bf16.mxu1 %v1749_v0 }
  0x98   : > { %655 = vmatpush1.bf16.msra.mxu0 %v1543_v33  ;;  %1447 = vmatpush1.bf16.msra.mxu1 %v1543_v33  ;;  %v407_v33 = vmul.f32 %v347_v22, %v1986_v11  ;;  %v409_v11 = vmul.f32 %v347_v22, %v2075_v47 }
  0x99   : > { %656 = vmatprep.subr.bf16.mxu0 %v1749_v0  ;;  %1432 = vmatprep.subr.bf16.mxu1 %v1749_v0 }
  0x9a   : > { %v471_v50 = vpack.c.bf16 %v407_v33, %v405_v28 }
  0x9c   : > { %657 = vmatpush1.bf16.msra.mxu0 %v1544_v38  ;;  %1448 = vmatpush1.bf16.msra.mxu1 %v1544_v38  ;;  %v441_v38 = vmul.f32 %v371_v25, %v1984_v10  ;;  %v442_v10 = vmul.f32 %v367_v49, %v2073_v46 }
  0x9d   : > { %658 = vmatprep.subr.bf16.mxu0 %v1749_v0  ;;  %1433 = vmatprep.subr.bf16.mxu1 %v1749_v0 }
  0x9e   : > { %v489_v51 = vpack.c.bf16 %v443_v7, %v441_v38  ;;  %v488_v57 = vpack.c.bf16 %v442_v10, %v440_v53  ;;  %v421_v7 = vmul.f32 %v2001_v16, %v2075_v47 }
  0xa0   : > { %659 = vmatpush1.bf16.msra.mxu0 %v1545_v41  ;;  %1449 = vmatpush1.bf16.msra.mxu1 %v1545_v41  ;;  %v343_v41 = vrot.slane %v315_v3, %v2063_v40  ;;  %v444_v3 = vmul.f32 %v367_v49, %v2095_v60 }
  0xa1   : > { %660 = vmatprep.subr.bf16.mxu0 %v1749_v0  ;;  %1434 = vmatprep.subr.bf16.mxu1 %v1749_v0 }
  0xa2   : > { %v404_v44 = vmul.f32 %v343_v41, %v2069_v43  ;;  %v406_v52 = vmul.f32 %v343_v41, %v2073_v46 }
  0xa4   : > { %661 = vmatpush1.bf16.msra.mxu0 %v1546_v45  ;;  %1450 = vmatpush1.bf16.msra.mxu1 %v1546_v45  ;;  %v468_v45 = vpack.c.bf16 %v402_v26, %v400_v12  ;;  %v470_v56 = vpack.c.bf16 %v406_v52, %v404_v44  ;;  %v450_v12 = vmul.f32 %v367_v49, %v2119_v21 }
  0xa5   : > { %662 = vmatprep.subr.bf16.mxu0 %v1749_v0  ;;  %1435 = vmatprep.subr.bf16.mxu1 %v1749_v0  ;;  %v398_v0 = vmul.f32 %v335_v42, %v2097_v61  ;;  %v486_v42 = vpack.c.bf16 %v438_v27, %v436_v19  ;;  %v375_v19 = vrot.slane %v2032_v30, %v2063_v40 }
  0xa6   : > { %v459_v30 = vmul.f32 %v2044_v34, %v2079_v48 }
  0xa7   : > { %v466_v17 = vpack.c.bf16 %v398_v0, %v396_v4  ;;  %v446_v4 = vmul.f32 %v367_v49, %v2097_v61  ;;  %v413_v0 = vmul.f32 %v347_v22, %v2099_v1  ;;  %v452_v33 = vmul.f32 %v375_v19, %v2069_v43 }
  0xa8   : > { %663 = vmatpush1.bf16.msra.mxu0 %v1547_v54  ;;  %1451 = vmatpush1.bf16.msra.mxu1 %v1547_v54  ;;  %v411_v54 = vmul.f32 %v347_v22, %v2079_v48  ;;  %v351_v22 = vrot.slane %v1993_v13, %v2063_v40  ;;  %v454_v38 = vmul.f32 %v375_v19, %v2073_v46 }
  0xa9   : > { %v490_v9 = vpack.c.bf16 %v446_v4, %v444_v3  ;;  %v475_v15 = vpack.c.bf16 %v415_v5, %v413_v0  ;;  %v457_v13 = vmul.f32 %v2044_v34, %v2075_v47  ;;  %v423_v40 = vmul.f32 %v2001_v16, %v2079_v48 }
  0xaa   : > { %v416_v27 = vmul.f32 %v351_v22, %v2069_v43  ;;  %v418_v28 = vmul.f32 %v351_v22, %v2073_v46  ;;  %v494_v43 = vpack.c.bf16 %v454_v38, %v452_v33  ;;  %v456_v36 = vmul.f32 %v375_v19, %v2095_v60 }
  0xab   : > { %665 = vmatmul.mubr.bf16.vlgmr.msra.gmra.mrb[0].mxu0 %v464_v58  ;;  %737 = vmatmul.mubr.bf16.vlgmr.msra.gmra.mrb[0].mxu1 %v482_v59  ;;  %v473_v58 = vpack.c.bf16 %v411_v54, %v409_v11  ;;  %v491_v59 = vpack.c.bf16 %v447_v55, %v445_v29  ;;  %v458_v37 = vmul.f32 %v375_v19, %v2097_v61 }
  0xac   : > { %672 = vmatprep.mubr.bf16.mxu0 %v467_v62  ;;  %744 = vmatprep.mubr.bf16.mxu1 %v485_v63  ;;  %v408_v62 = vmul.f32 %v343_v41, %v2095_v60  ;;  %v410_v63 = vmul.f32 %v343_v41, %v2097_v61  ;;  %v476_v46 = vpack.c.bf16 %v418_v28, %v416_v27 }
  0xad   : > { %v420_v47 = vmul.f32 %v351_v22, %v2095_v60  ;;  %v422_v31 = vmul.f32 %v351_v22, %v2097_v61  ;;  %v427_v48 = vmul.f32 %v2001_v16, %v2101_v2  ;;  %v460_v44 = vmul.f32 %v375_v19, %v2117_v20 }
  0xae   : > { %v472_v14 = vpack.c.bf16 %v410_v63, %v408_v62  ;;  %v462_v60 = vmul.f32 %v375_v19, %v2119_v21  ;;  %v424_v61 = vmul.f32 %v351_v22, %v2117_v20 }
  0xb3   : > { %673 = vmatmul.mubr.bf16.gmra.mrb[4].mxu0 %v466_v17  ;;  %745 = vmatmul.mubr.bf16.gmra.mrb[4].mxu1 %v484_v18  ;;  %v493_v17 = vpack.c.bf16 %v451_v8, %v449_v6  ;;  %v412_v18 = vmul.f32 %v343_v41, %v2117_v20 }
  0xb4   : > { %680 = vmatprep.mubr.bf16.mxu0 %v469_v23  ;;  %752 = vmatprep.mubr.bf16.mxu1 %v487_v24  ;;  %v414_v23 = vmul.f32 %v343_v41, %v2119_v21  ;;  %v448_v24 = vmul.f32 %v367_v49, %v2117_v20  ;;  %v497_v41 = vpack.c.bf16 %v459_v30, %v457_v13 }
  0xb5   : > { %v478_v49 = vpack.c.bf16 %v422_v31, %v420_v47 }
  0xb6   : > { %v474_v25 = vpack.c.bf16 %v414_v23, %v412_v18  ;;  %v492_v26 = vpack.c.bf16 %v450_v12, %v448_v24 }
  0xbb   : > { %681 = vmatmul.mubr.bf16.gmra.mrb[8].mxu0 %v468_v45  ;;  %753 = vmatmul.mubr.bf16.gmra.mrb[8].mxu1 %v486_v42  ;;  %v479_v45 = vpack.c.bf16 %v423_v40, %v421_v7  ;;  %v496_v42 = vpack.c.bf16 %v458_v37, %v456_v36 }
  0xbc   : > { %688 = vmatprep.mubr.bf16.mxu0 %v471_v50  ;;  %760 = vmatprep.mubr.bf16.mxu1 %v489_v51 }
  0xc3   : > { %689 = vmatmul.mubr.bf16.gmra.mrb[12].mxu0 %v470_v56  ;;  %761 = vmatmul.mubr.bf16.gmra.mrb[12].mxu1 %v488_v57 }
  0xc4   : > { %696 = vmatprep.mubr.bf16.mxu0 %v473_v58  ;;  %768 = vmatprep.mubr.bf16.mxu1 %v491_v59 }
  0xcb   : > { %697 = vmatmul.mubr.bf16.gmra.mrb[16].mxu0 %v472_v14  ;;  %769 = vmatmul.mubr.bf16.gmra.mrb[16].mxu1 %v490_v9 }
  0xcc   : > { %704 = vmatprep.mubr.bf16.mxu0 %v475_v15  ;;  %776 = vmatprep.mubr.bf16.mxu1 %v493_v17 }
  0xd3   : > { %705 = vmatmul.mubr.bf16.gmra.mrb[20].mxu0 %v474_v25  ;;  %777 = vmatmul.mubr.bf16.gmra.mrb[20].mxu1 %v492_v26 }
  0xd4   : > { %784 = vmatprep.mubr.bf16.mxu1 %v495_v39  ;;  %712 = vmatprep.mubr.bf16.mxu0 %v477_v35  ;;  %v461_v39 = vmul.f32 %v2044_v34, %v2099_v1  ;;  %v425_v35 = vmul.f32 %v2001_v16, %v2099_v1  ;;  %v426_v34 = vmul.f32 %v351_v22, %v2119_v21 }
  0xd5   : > { %v498_v1 = vpack.c.bf16 %v462_v60, %v460_v44 }
  0xd6   : > { %v499_v50 = vpack.c.bf16 %v463_v32, %v461_v39  ;;  %v481_v51 = vpack.c.bf16 %v427_v48, %v425_v35  ;;  %v480_v52 = vpack.c.bf16 %v426_v34, %v424_v61 }
  0xdb   : > { %785 = vmatmul.mubr.bf16.gmra.mrb[24].mxu1 %v494_v43  ;;  %713 = vmatmul.mubr.bf16.gmra.mrb[24].mxu0 %v476_v46 }
  0xdc   : > { %792 = vmatprep.mubr.bf16.mxu1 %v497_v41  ;;  %720 = vmatprep.mubr.bf16.mxu0 %v479_v45 }
  0xe3   : > { %793 = vmatmul.mubr.bf16.gmra.mrb[28].mxu1 %v496_v42  ;;  %721 = vmatmul.mubr.bf16.gmra.mrb[28].mxu0 %v478_v49 }
  0xe4   : > { %800 = vmatprep.mubr.bf16.mxu1 %v499_v50  ;;  %728 = vmatprep.mubr.bf16.mxu0 %v481_v51 }
  0xeb   : > { %801 = vmatmul.mubr.bf16.gmra.mrb[32].mxu1 %v498_v1  ;;  %729 = vmatmul.mubr.bf16.gmra.mrb[32].mxu0 %v480_v52 }
 0x17e   : > { %v738_v16 = vpop.f32.mrb[0].mxu1  ;;  %v2193_v2 = vpop.f32.mrb[0].mxu0 }
 0x17f   : > { %947 = vrot.lane.b32.xlu0 %v738_v16, %s1750_s18  ;;  %v740_v53 = vpop.f32.mrb[1].mxu1  ;;  %v668_v10 = vpop.f32.mrb[1].mxu0 }
 0x180   : > { %v741_v11 = vpop.f32.mrb[2].mxu1  ;;  %v2196_v54 = vpop.f32.mrb[2].mxu0 }
 0x181   : > { %949 = vrot.lane.b32.xlu1 %v741_v11, %s1750_s18  ;;  %v743_v20 = vpop.f32.mrb[3].mxu1  ;;  %v671_v21 = vpop.f32.mrb[3].mxu0 }
 0x186   : > { %v746_v29 = vpop.f32.mrb[4].mxu1  ;;  %v2199_v55 = vpop.f32.mrb[4].mxu0 }
 0x187   : > { %951 = vrot.lane.b32.xlu0 %v746_v29, %s1750_s18  ;;  %v748_v56 = vpop.f32.mrb[5].mxu1  ;;  %v676_v57 = vpop.f32.mrb[5].mxu0 }
 0x188   : > { %v749_v58 = vpop.f32.mrb[6].mxu1  ;;  %v2202_v59 = vpop.f32.mrb[6].mxu0 }
 0x189   : > { %953 = vrot.lane.b32.xlu1 %v749_v58, %s1750_s18  ;;  %v751_v62 = vpop.f32.mrb[7].mxu1  ;;  %v679_v63 = vpop.f32.mrb[7].mxu0 }
 0x18e   : > { %v754_v3 = vpop.f32.mrb[8].mxu1  ;;  %v2205_v4 = vpop.f32.mrb[8].mxu0 }
 0x18f   : > { %955 = vrot.lane.b32.xlu0 %v754_v3, %s1750_s18  ;;  %v756_v0 = vpop.f32.mrb[9].mxu1  ;;  %v684_v5 = vpop.f32.mrb[9].mxu0 }
 0x190   : > { %v757_v6 = vpop.f32.mrb[10].mxu1  ;;  %v2208_v8 = vpop.f32.mrb[10].mxu0 }
 0x191   : > { %957 = vrot.lane.b32.xlu1 %v757_v6, %s1750_s18  ;;  %v759_v14 = vpop.f32.mrb[11].mxu1  ;;  %v687_v9 = vpop.f32.mrb[11].mxu0 }
 0x196   : > { %v690_v15 = vpop.f32.mrb[12].mxu0  ;;  %v2211_v17 = vpop.f32.mrb[12].mxu1 }
 0x197   : > { %v764_v18 = vpop.f32.mrb[13].mxu1  ;;  %935 = vrot.lane.b32.xlu0 %v690_v15, %s1750_s18  ;;  %v692_v23 = vpop.f32.mrb[13].mxu0 }
 0x198   : > { %v2214_v24 = vpop.f32.mrb[14].mxu1  ;;  %v693_v12 = vpop.f32.mrb[14].mxu0 }
 0x199   : > { %v767_v22 = vpop.f32.mrb[15].mxu1  ;;  %v695_v25 = vpop.f32.mrb[15].mxu0 }
 0x19b   : > { %937 = vrot.lane.b32.xlu0 %v693_v12, %s1750_s18 }
 0x19e   : > { %v698_v26 = vpop.f32.mrb[16].mxu0  ;;  %v2217_v19 = vpop.f32.mrb[16].mxu1 }
 0x19f   : > { %v772_v27 = vpop.f32.mrb[17].mxu1  ;;  %939 = vrot.lane.b32.xlu1 %v698_v26, %s1750_s18  ;;  %v700_v28 = vpop.f32.mrb[17].mxu0 }
 0x1a0   : > { %v2220_v33 = vpop.f32.mrb[18].mxu1  ;;  %v701_v38 = vpop.f32.mrb[18].mxu0 }
 0x1a1   : > { %v775_v7 = vpop.f32.mrb[19].mxu1  ;;  %v703_v13 = vpop.f32.mrb[19].mxu0 }
 0x1a3   : > { %941 = vrot.lane.b32.xlu1 %v701_v38, %s1750_s18 }
 0x1a6   : > { %v706_v30 = vpop.f32.mrb[20].mxu0  ;;  %v2223_v40 = vpop.f32.mrb[20].mxu1 }
 0x1a7   : > { %v780_v43 = vpop.f32.mrb[21].mxu1  ;;  %943 = vrot.lane.b32.xlu0 %v706_v30, %s1750_s18  ;;  %v708_v46 = vpop.f32.mrb[21].mxu0 }
 0x1a8   : > { %v709_v41 = vpop.f32.mrb[22].mxu0  ;;  %v2226_v45 = vpop.f32.mrb[22].mxu1 }
 0x1a9   : > { %v783_v36 = vpop.f32.mrb[23].mxu1  ;;  %945 = vrot.lane.b32.xlu1 %v709_v41, %s1750_s18  ;;  %v711_v37 = vpop.f32.mrb[23].mxu0 }
 0x1ae   : > { %v786_v39 = vpop.f32.mrb[24].mxu1  ;;  %v714_v47 = vpop.f32.mrb[24].mxu0 }
 0x1af   : > { %v788_v31 = vpop.f32.mrb[25].mxu1  ;;  %959 = vrot.lane.b32.xlu0 %v786_v39, %s1750_s18  ;;  %v716_v32 = vpop.f32.mrb[25].mxu0 }
 0x1b0   : > { %v789_v35 = vpop.f32.mrb[26].mxu1  ;;  %v717_v48 = vpop.f32.mrb[26].mxu0 }
 0x1b1   : > { %v791_v42 = vpop.f32.mrb[27].mxu1  ;;  %961 = vrot.lane.b32.xlu1 %v789_v35, %s1750_s18  ;;  %v719_v49 = vpop.f32.mrb[27].mxu0 }
 0x1b6   : > { %v794_v50 = vpop.f32.mrb[28].mxu1  ;;  %v722_v51 = vpop.f32.mrb[28].mxu0 }
 0x1b7   : > { %v796_v44 = vpop.f32.mrb[29].mxu1  ;;  %963 = vrot.lane.b32.xlu0 %v794_v50, %s1750_s18  ;;  %v724_v60 = vpop.f32.mrb[29].mxu0 }
 0x1b8   : > { %v797_v61 = vpop.f32.mrb[30].mxu1  ;;  %v725_v34 = vpop.f32.mrb[30].mxu0 }
 0x1b9   : > { %v799_v1 = vpop.f32.mrb[31].mxu1  ;;  %965 = vrot.lane.b32.xlu1 %v797_v61, %s1750_s18  ;;  %v727_v52 = vpop.f32.mrb[31].mxu0 }
 0x1be   : > { %v802_v16 = vpop.f32.mrb[32].mxu1  ;;  %v730_v53 = vpop.f32.mrb[32].mxu0 }
 0x1bf   : > { %v804_v10 = vpop.f32.mrb[33].mxu1  ;;  %967 = vrot.lane.b32.xlu0 %v802_v16, %s1750_s18  ;;  %v732_v11 = vpop.f32.mrb[33].mxu0 }
 0x1c0   : > { %v805_v20 = vpop.f32.mrb[34].mxu1  ;;  %v733_v21 = vpop.f32.mrb[34].mxu0 }
 0x1c1   : > { %v807_v29 = vpop.f32.mrb[35].mxu1  ;;  %969 = vrot.lane.b32.xlu1 %v805_v20, %s1750_s18  ;;  %v735_v56 = vpop.f32.mrb[35].mxu0 }
 0x1f1   : > { %v948_v57 = vpop.permute.xlu0 %947 }
 0x1f2   : > { %v2235_v58 = vsub.f32 %v714_v47, %v948_v57  ;;  %v1013_v62 = vadd.f32 %v948_v57, %v714_v47 }
 0x1f3   : > { %v950_v63 = vpop.permute.xlu1 %949 }
 0x1f4   : > { %v1049_v3 = vmul.f32 %v1013_v62, %v1013_v62  ;;  %v2237_v0 = vsub.f32 %v717_v48, %v950_v63  ;;  %v1014_v5 = vadd.f32 %v950_v63, %v717_v48 }
 0x1f6   : > { %v1050_v6 = vmul.f32 %v1014_v5, %v1014_v5  ;;  %1091 = vrot.lane.b32.xlu0 %v1049_v3, %s1750_s18 }
 0x1f8   : > { %1093 = vrot.lane.b32.xlu1 %v1050_v6, %s1750_s18 }
 0x1f9   : > { %v952_v14 = vpop.permute.xlu0 %951 }
 0x1fa   : > { %v2241_v9 = vsub.f32 %v722_v51, %v952_v14  ;;  %v1015_v15 = vadd.f32 %v952_v14, %v722_v51 }
 0x1fb   : > { %v954_v18 = vpop.permute.xlu1 %953 }
 0x1fc   : > { %v1051_v23 = vmul.f32 %v1015_v15, %v1015_v15  ;;  %v2243_v12 = vsub.f32 %v725_v34, %v954_v18  ;;  %v1016_v22 = vadd.f32 %v954_v18, %v725_v34 }
 0x1fe   : > { %v1052_v25 = vmul.f32 %v1016_v22, %v1016_v22  ;;  %1095 = vrot.lane.b32.xlu0 %v1051_v23, %s1750_s18 }
 0x200   : > { %1097 = vrot.lane.b32.xlu1 %v1052_v25, %s1750_s18 }
 0x201   : > { %v956_v26 = vpop.permute.xlu0 %955 }
 0x202   : > { %v2247_v27 = vsub.f32 %v730_v53, %v956_v26  ;;  %v1017_v28 = vadd.f32 %v956_v26, %v730_v53  ;;  %v1032_v26 = vmul.f32 %v2237_v0, %v2237_v0 }
 0x203   : > { %v958_v38 = vpop.permute.xlu1 %957 }
 0x204   : > { %v1053_v7 = vmul.f32 %v1017_v28, %v1017_v28  ;;  %v2249_v13 = vsub.f32 %v733_v21, %v958_v38  ;;  %v1018_v30 = vadd.f32 %v958_v38, %v733_v21 }
 0x206   : > { %v1054_v43 = vmul.f32 %v1018_v30, %v1018_v30  ;;  %1099 = vrot.lane.b32.xlu0 %v1053_v7, %s1750_s18 }
 0x208   : > { %1101 = vrot.lane.b32.xlu1 %v1054_v43, %s1750_s18 }
 0x209   : > { %v936_v46 = vpop.permute.xlu0 %935 }
 0x20a   : > { %v2254_v41 = vsub.f32 %v2193_v2, %v936_v46  ;;  %v1007_v36 = vadd.f32 %v936_v46, %v2193_v2  ;;  %v1034_v46 = vmul.f32 %v2243_v12, %v2243_v12 }
 0x20c   : > { %v1043_v37 = vmul.f32 %v1007_v36, %v1007_v36 }
 0x20d   : > { %v938_v39 = vpop.permute.xlu0 %937 }
 0x20e   : > { %v2258_v47 = vsub.f32 %v2196_v54, %v938_v39  ;;  %v1008_v31 = vadd.f32 %v938_v39, %v2196_v54  ;;  %1079 = vrot.lane.b32.xlu0 %v1043_v37, %s1750_s18 }
 0x210   : > { %v1044_v32 = vmul.f32 %v1008_v31, %v1008_v31 }
 0x211   : > { %v940_v35 = vpop.permute.xlu1 %939 }
 0x212   : > { %v2263_v48 = vsub.f32 %v2199_v55, %v940_v35  ;;  %v1009_v42 = vadd.f32 %v940_v35, %v2199_v55  ;;  %1081 = vrot.lane.b32.xlu1 %v1044_v32, %s1750_s18  ;;  %v1035_v32 = vmul.f32 %v2247_v27, %v2247_v27 }
 0x214   : > { %v1045_v49 = vmul.f32 %v1009_v42, %v1009_v42 }
 0x215   : > { %v942_v2 = vpop.permute.xlu1 %941 }
 0x216   : > { %v2268_v50 = vsub.f32 %v2202_v59, %v942_v2  ;;  %v1010_v51 = vadd.f32 %v942_v2, %v2202_v59  ;;  %1083 = vrot.lane.b32.xlu0 %v1045_v49, %s1750_s18  ;;  %v1036_v49 = vmul.f32 %v2249_v13, %v2249_v13  ;;  %v1025_v13 = vmul.f32 %v2254_v41, %v2254_v41 }
 0x218   : > { %v1046_v54 = vmul.f32 %v1010_v51, %v1010_v51 }
 0x219   : > { %v944_v44 = vpop.permute.xlu0 %943 }
 0x21a   : > { %v2273_v60 = vsub.f32 %v2205_v4, %v944_v44  ;;  %v1011_v61 = vadd.f32 %v944_v44, %v2205_v4  ;;  %1085 = vrot.lane.b32.xlu1 %v1046_v54, %s1750_s18 }
 0x21b   : > { %v946_v55 = vpop.permute.xlu1 %945 }
 0x21c   : > { %v1047_v34 = vmul.f32 %v1011_v61, %v1011_v61  ;;  %v2278_v1 = vsub.f32 %v2208_v8, %v946_v55  ;;  %v1012_v52 = vadd.f32 %v946_v55, %v2208_v8 }
 0x21e   : > { %v1048_v16 = vmul.f32 %v1012_v52, %v1012_v52  ;;  %1087 = vrot.lane.b32.xlu0 %v1047_v34, %s1750_s18 }
 0x220   : > { %1089 = vrot.lane.b32.xlu1 %v1048_v16, %s1750_s18 }
 0x221   : > { %v960_v59 = vpop.permute.xlu0 %959 }
 0x222   : > { %v2284_v53 = vsub.f32 %v2211_v17, %v960_v59  ;;  %v1019_v4 = vadd.f32 %v960_v59, %v2211_v17 }
 0x223   : > { %v962_v10 = vpop.permute.xlu1 %961 }
 0x224   : > { %v1055_v11 = vmul.f32 %v1019_v4, %v1019_v4  ;;  %v2288_v20 = vsub.f32 %v2214_v24, %v962_v10  ;;  %v1020_v21 = vadd.f32 %v962_v10, %v2214_v24 }
 0x226   : > { %v1056_v29 = vmul.f32 %v1020_v21, %v1020_v21  ;;  %1103 = vrot.lane.b32.xlu0 %v1055_v11, %s1750_s18 }
 0x228   : > { %1105 = vrot.lane.b32.xlu1 %v1056_v29, %s1750_s18 }
 0x229   : > { %v964_v8 = vpop.permute.xlu0 %963 }
 0x22a   : > { %v2294_v56 = vsub.f32 %v2217_v19, %v964_v8  ;;  %v1021_v57 = vadd.f32 %v964_v8, %v2217_v19  ;;  %v1026_v8 = vmul.f32 %v2258_v47, %v2258_v47 }
 0x22b   : > { %v966_v62 = vpop.permute.xlu1 %965 }
 0x22c   : > { %v1057_v17 = vmul.f32 %v1021_v57, %v1021_v57  ;;  %v2298_v63 = vsub.f32 %v2220_v33, %v966_v62  ;;  %v1022_v3 = vadd.f32 %v966_v62, %v2220_v33  ;;  %v1031_v33 = vmul.f32 %v2235_v58, %v2235_v58 }
 0x22e   : > { %v1058_v5 = vmul.f32 %v1022_v3, %v1022_v3  ;;  %1107 = vrot.lane.b32.xlu0 %v1057_v17, %s1750_s18 }
 0x230   : > { %1109 = vrot.lane.b32.xlu1 %v1058_v5, %s1750_s18 }
 0x231   : > { %v968_v24 = vpop.permute.xlu0 %967 }
 0x232   : > { %v2304_v6 = vsub.f32 %v2223_v40, %v968_v24  ;;  %v1023_v14 = vadd.f32 %v968_v24, %v2223_v40 }
 0x233   : > { %v970_v15 = vpop.permute.xlu1 %969 }
 0x234   : > { %v1059_v19 = vmul.f32 %v1023_v14, %v1023_v14  ;;  %v2308_v18 = vsub.f32 %v2226_v45, %v970_v15  ;;  %v1024_v23 = vadd.f32 %v970_v15, %v2226_v45  ;;  %v1033_v45 = vmul.f32 %v2241_v9, %v2241_v9 }
 0x235   : > { %v1027_v14 = vmul.f32 %v2263_v48, %v2263_v48 }
 0x236   : > { %v1060_v22 = vmul.f32 %v1024_v23, %v1024_v23  ;;  %1111 = vrot.lane.b32.xlu0 %v1059_v19, %s1750_s18 }
 0x238   : > { %1113 = vrot.lane.b32.xlu1 %v1060_v22, %s1750_s18 }
 0x268   : > { %v1092_v25 = vpop.permute.xlu0 %1091 }
 0x269   : > { %v1139_v40 = vadd.f32 %v1092_v25, %v1031_v33 }
 0x26a   : > { %v1094_v28 = vpop.permute.xlu1 %1093 }
 0x26b   : > { %v1157_v38 = vadd.f32 1e-30, %v1139_v40  ;;  %v1140_v7 = vadd.f32 %v1094_v28, %v1032_v26  ;;  %v1028_v26 = vmul.f32 %v2268_v50, %v2268_v50  ;;  %v1030_v50 = vmul.f32 %v2278_v1, %v2278_v1 }
 0x26d   : > { %1548 = vlog2.f32 %v1157_v38  ;;  %v1158_v30 = vadd.f32 1e-30, %v1140_v7 }
 0x26f   : > { %1550 = vlog2.f32 %v1158_v30 }
 0x270   : > { %v1096_v43 = vpop.permute.xlu0 %1095 }
 0x271   : > { %v1141_v58 = vadd.f32 %v1096_v43, %v1033_v45  ;;  %v1029_v43 = vmul.f32 %v2273_v60, %v2273_v60 }
 0x272   : > { %v1098_v36 = vpop.permute.xlu1 %1097 }
 0x273   : > { %v1159_v37 = vadd.f32 1e-30, %v1141_v58  ;;  %v1142_v39 = vadd.f32 %v1098_v36, %v1034_v46 }
 0x275   : > { %1552 = vlog2.f32 %v1159_v37  ;;  %v1160_v0 = vadd.f32 1e-30, %v1142_v39 }
 0x277   : > { %v1549_v31 = vpop.eup %1548  ;;  %1554 = vlog2.f32 %v1160_v0 }
 0x278   : > { %v1182_v35 = vmul.f32 0.6931472, %v1549_v31  ;;  %v1100_v42 = vpop.permute.xlu0 %1099 }
 0x279   : > { %v1551_v9 = vpop.eup %1550  ;;  %v1143_v2 = vadd.f32 %v1100_v42, %v1035_v32 }
 0x27a   : > { %v1211_v12 = vmul.f32 0.5, %v1182_v35  ;;  %v1184_v51 = vmul.f32 0.6931472, %v1551_v9  ;;  %v1102_v54 = vpop.permute.xlu1 %1101 }
 0x27b   : > { %v1161_v44 = vadd.f32 1e-30, %v1143_v2  ;;  %v1144_v61 = vadd.f32 %v1102_v54, %v1036_v49 }
 0x27c   : > { %v1402_v55 = vadd.f32 -6.2383246, %v1211_v12  ;;  %v1212_v34 = vmul.f32 0.5, %v1184_v51  ;;  %v1037_v12 = vmul.f32 %v2284_v53, %v2284_v53 }
 0x27d   : > { %1556 = vlog2.f32 %v1161_v44  ;;  %v1162_v52 = vadd.f32 1e-30, %v1144_v61  ;;  %v1038_v44 = vmul.f32 %v2288_v20, %v2288_v20  ;;  %v1039_v20 = vmul.f32 %v2294_v56, %v2294_v56 }
 0x27e   : > { %1248 = vst.msk [vmem:[%s2326_s29 + $0x30] sm:$0xff] %vm1241_vm0, %v1402_v55  ;;  %v1403_v27 = vadd.f32 -6.2383246, %v1212_v34 }
 0x27f   : > { %v1553_v16 = vpop.eup %1552  ;;  %1558 = vlog2.f32 %v1162_v52 }
 0x280   : > { %1249 = vst.msk [vmem:[%s2326_s29 + $0x38] sm:$0xff] %vm1241_vm0, %v1403_v27  ;;  %v1186_v59 = vmul.f32 0.6931472, %v1553_v16  ;;  %v1080_v4 = vpop.permute.xlu0 %1079 }
 0x281   : > { %v1555_v10 = vpop.eup %1554  ;;  %v1133_v11 = vadd.f32 %v1080_v4, %v1025_v13 }
 0x282   : > { %v1213_v21 = vmul.f32 0.5, %v1186_v59  ;;  %v1188_v29 = vmul.f32 0.6931472, %v1555_v10 }
 0x283   : > { %v1151_v57 = vadd.f32 1e-30, %v1133_v11 }
 0x284   : > { %v1404_v62 = vadd.f32 -6.2383246, %v1213_v21  ;;  %v1214_v17 = vmul.f32 0.5, %v1188_v29  ;;  %v1082_v3 = vpop.permute.xlu1 %1081 }
 0x285   : > { %1560 = vlog2.f32 %v1151_v57  ;;  %v1134_v41 = vadd.f32 %v1082_v3, %v1026_v8  ;;  %v1040_v57 = vmul.f32 %v2298_v63, %v2298_v63  ;;  %v1041_v63 = vmul.f32 %v2304_v6, %v2304_v6 }
 0x286   : > { %1250 = vst.msk [vmem:[%s2326_s29 + $0x40] sm:$0xff] %vm1241_vm0, %v1404_v62  ;;  %v1405_v5 = vadd.f32 -6.2383246, %v1214_v17 }
 0x287   : > { %v1557_v24 = vpop.eup %1556  ;;  %v1152_v15 = vadd.f32 1e-30, %v1134_v41 }
 0x288   : > { %1251 = vst.msk [vmem:[%s2326_s29 + $0x48] sm:$0xff] %vm1241_vm0, %v1405_v5  ;;  %v1190_v19 = vmul.f32 0.6931472, %v1557_v24  ;;  %v1084_v23 = vpop.permute.xlu0 %1083 }
 0x289   : > { %v1559_v47 = vpop.eup %1558  ;;  %1562 = vlog2.f32 %v1152_v15  ;;  %v1135_v22 = vadd.f32 %v1084_v23, %v1027_v14 }
 0x28a   : > { %v1215_v33 = vmul.f32 0.5, %v1190_v19  ;;  %v1192_v25 = vmul.f32 0.6931472, %v1559_v47 }
 0x28b   : > { %v1153_v40 = vadd.f32 1e-30, %v1135_v22 }
 0x28c   : > { %v1406_v28 = vadd.f32 -6.2383246, %v1215_v33  ;;  %v1216_v38 = vmul.f32 0.5, %v1192_v25  ;;  %v1086_v7 = vpop.permute.xlu1 %1085  ;;  %v1042_v25 = vmul.f32 %v2308_v18, %v2308_v18 }
 0x28d   : > { %1564 = vlog2.f32 %v1153_v40  ;;  %v1136_v48 = vadd.f32 %v1086_v7, %v1028_v26 }
 0x28e   : > { %1252 = vst.msk [vmem:[%s2326_s29 + $0x50] sm:$0xff] %vm1241_vm0, %v1406_v28  ;;  %v1407_v30 = vadd.f32 -6.2383246, %v1216_v38 }
 0x28f   : > { %v1561_v45 = vpop.eup %1560  ;;  %v1154_v46 = vadd.f32 1e-30, %v1136_v48 }
 0x290   : > { %1253 = vst.msk [vmem:[%s2326_s29 + $0x58] sm:$0xff] %vm1241_vm0, %v1407_v30  ;;  %v1170_v58 = vmul.f32 0.6931472, %v1561_v45  ;;  %v1088_v36 = vpop.permute.xlu0 %1087 }
 0x291   : > { %1566 = vlog2.f32 %v1154_v46  ;;  %v1137_v37 = vadd.f32 %v1088_v36, %v1029_v43 }
 0x292   : > { %v1205_v39 = vmul.f32 0.5, %v1170_v58  ;;  %v1090_v0 = vpop.permute.xlu1 %1089 }
 0x293   : > { %v1563_v31 = vpop.eup %1562  ;;  %v1155_v32 = vadd.f32 1e-30, %v1137_v37  ;;  %v1138_v35 = vadd.f32 %v1090_v0, %v1030_v50 }
 0x294   : > { %v1396_v42 = vadd.f32 -6.2383246, %v1205_v39  ;;  %v1172_v9 = vmul.f32 0.6931472, %v1563_v31 }
 0x295   : > { %1568 = vlog2.f32 %v1155_v32  ;;  %v1156_v60 = vadd.f32 1e-30, %v1138_v35 }
 0x296   : > { %1242 = vst.msk [vmem:[%s2326_s29] sm:$0xff] %vm1241_vm0, %v1396_v42  ;;  %v1206_v49 = vmul.f32 0.5, %v1172_v9 }
 0x297   : > { %v1565_v2 = vpop.eup %1564  ;;  %1570 = vlog2.f32 %v1156_v60 }
 0x298   : > { %v1397_v1 = vadd.f32 -6.2383246, %v1206_v49  ;;  %v1174_v51 = vmul.f32 0.6931472, %v1565_v2  ;;  %v1104_v54 = vpop.permute.xlu0 %1103 }
 0x299   : > { %v1145_v61 = vadd.f32 %v1104_v54, %v1037_v12 }
 0x29a   : > { %1243 = vst.msk [vmem:[%s2326_s29 + $0x8] sm:$0xff] %vm1241_vm0, %v1397_v1  ;;  %v1207_v55 = vmul.f32 0.5, %v1174_v51  ;;  %v1106_v34 = vpop.permute.xlu1 %1105 }
 0x29b   : > { %v1567_v52 = vpop.eup %1566  ;;  %v1163_v27 = vadd.f32 1e-30, %v1145_v61  ;;  %v1146_v16 = vadd.f32 %v1106_v34, %v1038_v44 }
 0x29c   : > { %v1398_v13 = vadd.f32 -6.2383246, %v1207_v55  ;;  %v1176_v59 = vmul.f32 0.6931472, %v1567_v52 }
 0x29d   : > { %1572 = vlog2.f32 %v1163_v27  ;;  %v1164_v53 = vadd.f32 1e-30, %v1146_v16 }
 0x29e   : > { %1244 = vst.msk [vmem:[%s2326_s29 + $0x10] sm:$0xff] %vm1241_vm0, %v1398_v13  ;;  %v1208_v4 = vmul.f32 0.5, %v1176_v59 }
 0x29f   : > { %v1569_v10 = vpop.eup %1568  ;;  %1574 = vlog2.f32 %v1164_v53 }
 0x2a0   : > { %v1399_v11 = vadd.f32 -6.2383246, %v1208_v4  ;;  %v1178_v21 = vmul.f32 0.6931472, %v1569_v10  ;;  %v1108_v29 = vpop.permute.xlu0 %1107 }
 0x2a1   : > { %v1571_v8 = vpop.eup %1570  ;;  %v1147_v62 = vadd.f32 %v1108_v29, %v1039_v20 }
 0x2a2   : > { %1245 = vst.msk [vmem:[%s2326_s29 + $0x18] sm:$0xff] %vm1241_vm0, %v1399_v11  ;;  %v1209_v17 = vmul.f32 0.5, %v1178_v21  ;;  %v1180_v3 = vmul.f32 0.6931472, %v1571_v8  ;;  %v1110_v41 = vpop.permute.xlu1 %1109 }
 0x2a3   : > { %v1165_v5 = vadd.f32 1e-30, %v1147_v62  ;;  %v1148_v24 = vadd.f32 %v1110_v41, %v1040_v57 }
 0x2a4   : > { %v1400_v14 = vadd.f32 -6.2383246, %v1209_v17  ;;  %v1210_v56 = vmul.f32 0.5, %v1180_v3 }
 0x2a5   : > { %1576 = vlog2.f32 %v1165_v5  ;;  %v1166_v15 = vadd.f32 1e-30, %v1148_v24 }
 0x2a6   : > { %1246 = vst.msk [vmem:[%s2326_s29 + $0x20] sm:$0xff] %vm1241_vm0, %v1400_v14  ;;  %v1401_v19 = vadd.f32 -6.2383246, %v1210_v56 }
 0x2a7   : > { %v1573_v23 = vpop.eup %1572  ;;  %1578 = vlog2.f32 %v1166_v15 }
 0x2a8   : > { %1247 = vst.msk [vmem:[%s2326_s29 + $0x28] sm:$0xff] %vm1241_vm0, %v1401_v19  ;;  %v1194_v47 = vmul.f32 0.6931472, %v1573_v23  ;;  %v1112_v22 = vpop.permute.xlu0 %1111 }
 0x2a9   : > { %v1575_v33 = vpop.eup %1574  ;;  %v1149_v26 = vadd.f32 %v1112_v22, %v1041_v63 }
 0x2aa   : > { %v1217_v40 = vmul.f32 0.5, %v1194_v47  ;;  %v1196_v28 = vmul.f32 0.6931472, %v1575_v33  ;;  %v1114_v38 = vpop.permute.xlu1 %1113 }
 0x2ab   : > { %v1167_v7 = vadd.f32 1e-30, %v1149_v26  ;;  %v1150_v48 = vadd.f32 %v1114_v38, %v1042_v25 }
 0x2ac   : > { %v1408_v30 = vadd.f32 -6.2383246, %v1217_v40  ;;  %v1218_v6 = vmul.f32 0.5, %v1196_v28 }
 0x2ad   : > { %1580 = vlog2.f32 %v1167_v7  ;;  %v1168_v45 = vadd.f32 1e-30, %v1150_v48 }
 0x2ae   : > { %1254 = vst.msk [vmem:[%s2326_s29 + $0x60] sm:$0xff] %vm1241_vm0, %v1408_v30  ;;  %v1409_v43 = vadd.f32 -6.2383246, %v1218_v6 }
 0x2af   : > { %v1577_v46 = vpop.eup %1576  ;;  %1582 = vlog2.f32 %v1168_v45 }
 0x2b0   : > { %1255 = vst.msk [vmem:[%s2326_s29 + $0x68] sm:$0xff] %vm1241_vm0, %v1409_v43  ;;  %v1198_v18 = vmul.f32 0.6931472, %v1577_v46 }
 0x2b1   : > { %v1579_v58 = vpop.eup %1578 }
 0x2b2   : > { %v1219_v36 = vmul.f32 0.5, %v1198_v18  ;;  %v1200_v50 = vmul.f32 0.6931472, %v1579_v58 }
 0x2b4   : > { %v1410_v37 = vadd.f32 -6.2383246, %v1219_v36  ;;  %v1220_v39 = vmul.f32 0.5, %v1200_v50 }
 0x2b6   : > { %1256 = vst.msk [vmem:[%s2326_s29 + $0x70] sm:$0xff] %vm1241_vm0, %v1410_v37  ;;  %v1411_v0 = vadd.f32 -6.2383246, %v1220_v39 }
 0x2b7   : > { %v1581_v31 = vpop.eup %1580 }
 0x2b8   : > { %1257 = vst.msk [vmem:[%s2326_s29 + $0x78] sm:$0xff] %vm1241_vm0, %v1411_v0  ;;  %v1202_v32 = vmul.f32 0.6931472, %v1581_v31 }
 0x2b9   : > { %v1583_v35 = vpop.eup %1582 }
 0x2ba   : > { %v1221_v42 = vmul.f32 0.5, %v1202_v32  ;;  %v1204_v9 = vmul.f32 0.6931472, %v1583_v35 }
 0x2bc   : > { %v1412_v60 = vadd.f32 -6.2383246, %v1221_v42  ;;  %v1222_v49 = vmul.f32 0.5, %v1204_v9 }
 0x2be   : > { %1258 = vst.msk [vmem:[%s2326_s29 + $0x80] sm:$0xff] %vm1241_vm0, %v1412_v60  ;;  %v1413_v2 = vadd.f32 -6.2383246, %v1222_v49 }
 0x2c0   : > { %1259 = vst.msk [vmem:[%s2326_s29 + $0x88] sm:$0xff] %vm1241_vm0, %v1413_v2 }
 0x2c1   : > { %1683 = shalt.err (!%p1680_p2)
}
 0x2c2   : > { %s1684_s24 = scalar_lea.hbm %s2389_s22, 2304  ;;  %s1688_s7 = scalar_lea.hbm %s2442_s3, 4608 }
 0x2c3   : > { %p1685_p13 = scmp.ne.s32.totalorder %s2389_s22, %s1684_s24  ;;  %p1689_p4 = scmp.lt.u32.totalorder %s2389_s22, %s2442_s3 }
 0x2c4   : > { %p1690_p7 = scmp.lt.u32.totalorder %s1688_s7, %s1684_s24  ;;  %p1692_p11 = scmp.lt.u32.totalorder %s1684_s24, %s2389_s22 }
 0x2c5   : > { %p1686_p6 = pnand %p1685_p13, %p2456_p0 }
 0x2c6   : > { %p1691_p8 = por %p1690_p7, %p1689_p4 }
 0x2c7   : > { %p1687_p10 = pneg %p1686_p6 }
 0x2c8   : > { %p1693_p1 = por %p1692_p11, %p1691_p8 }
 0x2ca   : > { %p1694_p3 = pnand %p1693_p1, %p1687_p10 }
 0x2cc   : > { %1697 = shalt.err (!%p1694_p3)
}
 0x2cd   : > { %s1752_s20 = smov 128   ;;  %s1753_s29 = smov 8  }
 0x2ce   : > { %1466 = dma.vmem_to_hbm [thread:$0]  (%p2456_p0), %s2391_s17, 2304, %s2389_s22, %s1261_s16, %s1752_s20, %s1752_s20, %s1753_s29  }
 0x2cf PF: > { %s1290_s30 = sand.u32 1, %s1728_s12   ;;  %p2457_p5 = scmp.ne.s32.totalorder %s2447_s19, 0 }
 0x2d0   : > { %p2458_p9 = scmp.ge.s32.totalorder %s1740_s15, 2  ;;  %s1291_s26 = scalar_lea.sflag [#allocation5], %s1290_s30 }
 0x2d2   : > { %p1480_p12 = pnand %p2458_p9, %p2457_p5 }
 0x2d4   : > { %1723 = dma.done.wait (!%p1480_p12), %s1291_s26, 2304  }
 0x2d5   : > { %1725 = vsyncadd (!%p1480_p12), %s1291_s26, 4294964992  ;;  %p17_p2 = scmp.ge.s32.totalorder %s1887_s6, 4   ;;  %s2459_s12 = smov %s1732_s13 }
 0x2d6   : > { %s2460_s13 = smov %s1736_s14  ;;  %s2461_s14 = smov %s1896_s9 }
 0x2d7   : > { %s2462_s15 = smov %s1887_s6  ;;  %19 = sbr.rel (!%p17_p2) target bundleno = 6 (0x6), region = 85 }
 0x2de   :  { %1296 = vsyncpa [#allocation4], 1 }
 0x2df   :  { %1298 = vsyncpa [#allocation4 + $0x1], 1 }
 0x2e0   :  { %1299 = vsyncpa [#allocation7], 1 }
 0x2e1   :  { %1300 = vsyncpa [#allocation5], 1 }
 0x2e2   :  { %1302 = vsyncpa [#allocation5 + $0x1], 1 }

</bundles_post_ra>
